<compile_context>
chip_gen: v7x
topology: tpu7x:2x2x1
jax: 0.10.0
libtpu: 0.0.40
codegen_flags: <defaults>
</compile_context>

<pallas_src>
import jax
import jax.numpy as jnp
from jax.experimental import pallas as pl
from jax.experimental.pallas import tpu as pltpu

VOXEL_SIZE = 0.02   # GridSampling3D size
C_IN = 4            # [ones, quantized xyz]
HIDDEN = 32
C_OUT = 32          # FCGF descriptor dim
PACK = 4            # points packed per output row -> 4 * 32 = 128 lanes (dense vst)
MAX_TILE = 8192     # points per grid step (double-buffered VMEM ~2.2 MiB at 8192)


def minkowski_layer_kernel(pos_ref, w1_ref, b1_ref, w2_ref, b2_ref, feat_ref):
    # pos_ref: (tile//4, 12) -- row-major view of (tile, 3); 4 points' xyz per row
    pos4 = pos_ref[...]
    qc4 = jnp.floor(pos4 / VOXEL_SIZE)          # GridSampling3D voxel quantization

    w1 = w1_ref[...]        # (3, HIDDEN)  xyz rows of layer 1
    b1 = b1_ref[...]        # (1, HIDDEN)  bias with the AddOnes column folded in
    w2 = w2_ref[...]        # (HIDDEN, C_OUT)
    b2 = b2_ref[...]        # (1, C_OUT)

    outs = []
    for j in range(PACK):
        q = qc4[:, 3 * j:3 * j + 3]             # (tile//4, 3) coords of sub-point j
        # layer 1 as three broadcast FMAs (K=3 contraction is a degenerate MXU shape)
        h = (q[:, 0:1] * w1[0:1, :]
             + q[:, 1:2] * w1[1:2, :]
             + q[:, 2:3] * w1[2:3, :]
             + b1)
        h = jnp.maximum(h, 0.0)
        # layer 2 on the MXU (32x32)
        f = jnp.dot(h, w2, preferred_element_type=jnp.float32) + b2
        # FCGF-style L2-normalized descriptors
        inv_norm = jax.lax.rsqrt(jnp.sum(f * f, axis=-1, keepdims=True) + 1e-12)
        outs.append(f * inv_norm)

    # single lane-dense (.., 128) store instead of masked 32-lane partial stores
    feat_ref[...] = jnp.concatenate(outs, axis=1)


def init_params(key):
    k1, k2 = jax.random.split(key)
    w1 = (jax.random.normal(k1, (C_IN, HIDDEN), jnp.float32)
          * (1.0 / jnp.sqrt(C_IN)))
    b1 = jnp.zeros((1, HIDDEN), jnp.float32)
    w2 = (jax.random.normal(k2, (HIDDEN, C_OUT), jnp.float32)
          * (1.0 / jnp.sqrt(HIDDEN)))
    b2 = jnp.zeros((1, C_OUT), jnp.float32)
    return w1, b1, w2, b2


def _choose_tile(n):
    """Points per grid step: as large as possible, but keep >=2 grid steps (v7x)."""
    half = -(-n // 2)                 # ceil(n / 2)
    half = -(-half // 128) * 128      # round up to a multiple of 128
    return int(max(128, min(MAX_TILE, half)))


def minkowski_layer(x, params):
    """Mirrors MinokowskiLayer.forward for a torch.Tensor input."""
    pos = jnp.squeeze(x)                                  # x.squeeze() -> (N, 3)
    n = pos.shape[0]
    tile = _choose_tile(n)
    n_pad = -(-n // tile) * tile
    # TODO(synk): for million-point clouds, mask the tail tile instead of jnp.pad.
    pos_p = jnp.pad(pos, ((0, n_pad - n), (0, 0)))
    pos_packed = pos_p.reshape(n_pad // PACK, 3 * PACK)   # free row-major view

    w1, b1, w2, b2 = params
    w1_xyz = w1[1:]                 # xyz rows of layer 1
    b1_fused = w1[0:1] + b1         # fold the AddOnes feature column into the bias

    t4 = tile // PACK
    feat_packed = pl.pallas_call(
        minkowski_layer_kernel,
        out_shape=jax.ShapeDtypeStruct((n_pad // PACK, C_OUT * PACK), jnp.float32),
        grid_spec=pltpu.PrefetchScalarGridSpec(
            num_scalar_prefetch=0,
            grid=(n_pad // tile,),
            in_specs=[
                pl.BlockSpec((t4, 3 * PACK), lambda i: (i, 0)),
                pl.BlockSpec((3, HIDDEN), lambda i: (0, 0)),
                pl.BlockSpec((1, HIDDEN), lambda i: (0, 0)),
                pl.BlockSpec((HIDDEN, C_OUT), lambda i: (0, 0)),
                pl.BlockSpec((1, C_OUT), lambda i: (0, 0)),
            ],
            out_specs=pl.BlockSpec((t4, C_OUT * PACK), lambda i: (i, 0)),
        ),
        compiler_params=pltpu.CompilerParams(
            dimension_semantics=("parallel",)),
    )(pos_packed, w1_xyz, b1_fused, w2, b2)

    # free row-major view back to (N, C_OUT) per-point descriptors
    feat = feat_packed.reshape(n_pad, C_OUT)[:n]

    # TODO(synk): GridSampling3D(mode='last') voxel de-duplication (data-dependent
    # unique/scatter) has no clean Pallas equivalent; all quantized points are kept.
    return {'xyz': pos, 'features': feat}


if __name__ == "__main__":
    key = jax.random.PRNGKey(0)
    k_pts, k_par = jax.random.split(key)
    # point cloud: batch dim of 1 (squeezed inside), 256 points, xyz
    x = jax.random.normal(k_pts, (1, 256, 3), jnp.float32)
    params = init_params(k_par)

    out = minkowski_layer(x, params)
    jax.block_until_ready(out['features'])
    assert out['xyz'].shape == (256, 3)
    assert out['features'].shape == (256, C_OUT)
    assert bool(jnp.all(jnp.isfinite(out['features'])))
    print("KERNEL_OK")
</pallas_src>

<mosaic_0001>
module attributes {stable_mosaic.version = 11 : i64} {
  func.func @minkowski_layer_kernel(%arg0: i32, %arg1: memref<32x12xf32, #tpu.memory_space<vmem>>, %arg2: memref<3x32xf32, #tpu.memory_space<vmem>>, %arg3: memref<1x32xf32, #tpu.memory_space<vmem>>, %arg4: memref<32x32xf32, #tpu.memory_space<vmem>>, %arg5: memref<1x32xf32, #tpu.memory_space<vmem>>, %arg6: memref<32x128xf32, #tpu.memory_space<vmem>>) attributes {dimension_semantics = [#tpu.dimension_semantics<parallel>], iteration_bounds = array<i64: 2>, scalar_prefetch = 0 : i64, scratch_operands = 0 : i64, tpu.core_type = #tpu.core_type<tc>, window_params = [{transform_indices = @transform_0, window_bounds = array<i64: 32, 12>}, {pipeline_mode = #tpu.pipeline_mode<synchronous>, transform_indices = @transform_1, window_bounds = array<i64: 3, 32>}, {pipeline_mode = #tpu.pipeline_mode<synchronous>, transform_indices = @transform_2, window_bounds = array<i64: 1, 32>}, {pipeline_mode = #tpu.pipeline_mode<synchronous>, transform_indices = @transform_3, window_bounds = array<i64: 32, 32>}, {pipeline_mode = #tpu.pipeline_mode<synchronous>, transform_indices = @transform_4, window_bounds = array<i64: 1, 32>}, {transform_indices = @transform_5, window_bounds = array<i64: 32, 128>}]} {
    %c0 = arith.constant 0 : index
    %c0_0 = arith.constant 0 : index
    %0 = vector.load %arg1[%c0, %c0_0] : memref<32x12xf32, #tpu.memory_space<vmem>>, vector<32x12xf32>
    %cst = arith.constant 2.000000e-02 : f32
    %1 = vector.broadcast %cst : f32 to vector<32x12xf32>
    %2 = arith.divf %0, %1 : vector<32x12xf32>
    %3 = math.floor %2 : vector<32x12xf32>
    %c0_1 = arith.constant 0 : index
    %c0_2 = arith.constant 0 : index
    %4 = vector.load %arg2[%c0_1, %c0_2] : memref<3x32xf32, #tpu.memory_space<vmem>>, vector<3x32xf32>
    %c0_3 = arith.constant 0 : index
    %c0_4 = arith.constant 0 : index
    %5 = vector.load %arg3[%c0_3, %c0_4] : memref<1x32xf32, #tpu.memory_space<vmem>>, vector<1x32xf32>
    %c0_5 = arith.constant 0 : index
    %c0_6 = arith.constant 0 : index
    %6 = vector.load %arg4[%c0_5, %c0_6] : memref<32x32xf32, #tpu.memory_space<vmem>>, vector<32x32xf32>
    %c0_7 = arith.constant 0 : index
    %c0_8 = arith.constant 0 : index
    %7 = vector.load %arg5[%c0_7, %c0_8] : memref<1x32xf32, #tpu.memory_space<vmem>>, vector<1x32xf32>
    %8 = vector.extract_strided_slice %3 {offsets = [0, 0], sizes = [32, 3], strides = [1, 1]} : vector<32x12xf32> to vector<32x3xf32>
    %9 = vector.extract_strided_slice %8 {offsets = [0, 0], sizes = [32, 1], strides = [1, 1]} : vector<32x3xf32> to vector<32x1xf32>
    %10 = vector.extract_strided_slice %4 {offsets = [0, 0], sizes = [1, 32], strides = [1, 1]} : vector<3x32xf32> to vector<1x32xf32>
    %11 = vector.broadcast %9 : vector<32x1xf32> to vector<32x32xf32>
    %12 = vector.broadcast %10 : vector<1x32xf32> to vector<32x32xf32>
    %13 = arith.mulf %11, %12 : vector<32x32xf32>
    %14 = vector.extract_strided_slice %8 {offsets = [0, 1], sizes = [32, 1], strides = [1, 1]} : vector<32x3xf32> to vector<32x1xf32>
    %15 = vector.extract_strided_slice %4 {offsets = [1, 0], sizes = [1, 32], strides = [1, 1]} : vector<3x32xf32> to vector<1x32xf32>
    %16 = vector.broadcast %14 : vector<32x1xf32> to vector<32x32xf32>
    %17 = vector.broadcast %15 : vector<1x32xf32> to vector<32x32xf32>
    %18 = arith.mulf %16, %17 : vector<32x32xf32>
    %19 = arith.addf %13, %18 : vector<32x32xf32>
    %20 = vector.extract_strided_slice %8 {offsets = [0, 2], sizes = [32, 1], strides = [1, 1]} : vector<32x3xf32> to vector<32x1xf32>
    %21 = vector.extract_strided_slice %4 {offsets = [2, 0], sizes = [1, 32], strides = [1, 1]} : vector<3x32xf32> to vector<1x32xf32>
    %22 = vector.broadcast %20 : vector<32x1xf32> to vector<32x32xf32>
    %23 = vector.broadcast %21 : vector<1x32xf32> to vector<32x32xf32>
    %24 = arith.mulf %22, %23 : vector<32x32xf32>
    %25 = arith.addf %19, %24 : vector<32x32xf32>
    %26 = vector.broadcast %5 : vector<1x32xf32> to vector<32x32xf32>
    %27 = arith.addf %25, %26 : vector<32x32xf32>
    %cst_9 = arith.constant 0.000000e+00 : f32
    %28 = vector.broadcast %cst_9 : f32 to vector<32x32xf32>
    %29 = arith.maximumf %27, %28 : vector<32x32xf32>
    %cst_10 = arith.constant dense<0.000000e+00> : vector<32x32xf32>
    %30 = tpu.matmul %29, %6, %cst_10 {dimension_numbers = #tpu.dot_dimension_numbers<[1], [0], [0], [1], [0, 0, 1, 1], [], []>} : vector<32x32xf32>, vector<32x32xf32>, vector<32x32xf32> -> vector<32x32xf32>
    %31 = vector.broadcast %7 : vector<1x32xf32> to vector<32x32xf32>
    %32 = arith.addf %30, %31 : vector<32x32xf32>
    %33 = arith.mulf %32, %32 : vector<32x32xf32>
    %cst_11 = arith.constant dense<0.000000e+00> : vector<32xf32>
    %34 = vector.multi_reduction <add>, %33, %cst_11 [1] : vector<32x32xf32> to vector<32xf32>
    %35 = vector.shape_cast %34 : vector<32xf32> to vector<32x1xf32>
    %cst_12 = arith.constant 9.99999996E-13 : f32
    %36 = vector.broadcast %cst_12 : f32 to vector<32x1xf32>
    %37 = arith.addf %35, %36 : vector<32x1xf32>
    %38 = math.rsqrt %37 : vector<32x1xf32>
    %39 = vector.broadcast %38 : vector<32x1xf32> to vector<32x32xf32>
    %40 = arith.mulf %32, %39 : vector<32x32xf32>
    %41 = vector.extract_strided_slice %3 {offsets = [0, 3], sizes = [32, 3], strides = [1, 1]} : vector<32x12xf32> to vector<32x3xf32>
    %42 = vector.extract_strided_slice %41 {offsets = [0, 0], sizes = [32, 1], strides = [1, 1]} : vector<32x3xf32> to vector<32x1xf32>
    %43 = vector.extract_strided_slice %4 {offsets = [0, 0], sizes = [1, 32], strides = [1, 1]} : vector<3x32xf32> to vector<1x32xf32>
    %44 = vector.broadcast %42 : vector<32x1xf32> to vector<32x32xf32>
    %45 = vector.broadcast %43 : vector<1x32xf32> to vector<32x32xf32>
    %46 = arith.mulf %44, %45 : vector<32x32xf32>
    %47 = vector.extract_strided_slice %41 {offsets = [0, 1], sizes = [32, 1], strides = [1, 1]} : vector<32x3xf32> to vector<32x1xf32>
    %48 = vector.extract_strided_slice %4 {offsets = [1, 0], sizes = [1, 32], strides = [1, 1]} : vector<3x32xf32> to vector<1x32xf32>
    %49 = vector.broadcast %47 : vector<32x1xf32> to vector<32x32xf32>
    %50 = vector.broadcast %48 : vector<1x32xf32> to vector<32x32xf32>
    %51 = arith.mulf %49, %50 : vector<32x32xf32>
    %52 = arith.addf %46, %51 : vector<32x32xf32>
    %53 = vector.extract_strided_slice %41 {offsets = [0, 2], sizes = [32, 1], strides = [1, 1]} : vector<32x3xf32> to vector<32x1xf32>
    %54 = vector.extract_strided_slice %4 {offsets = [2, 0], sizes = [1, 32], strides = [1, 1]} : vector<3x32xf32> to vector<1x32xf32>
    %55 = vector.broadcast %53 : vector<32x1xf32> to vector<32x32xf32>
    %56 = vector.broadcast %54 : vector<1x32xf32> to vector<32x32xf32>
    %57 = arith.mulf %55, %56 : vector<32x32xf32>
    %58 = arith.addf %52, %57 : vector<32x32xf32>
    %59 = vector.broadcast %5 : vector<1x32xf32> to vector<32x32xf32>
    %60 = arith.addf %58, %59 : vector<32x32xf32>
    %cst_13 = arith.constant 0.000000e+00 : f32
    %61 = vector.broadcast %cst_13 : f32 to vector<32x32xf32>
    %62 = arith.maximumf %60, %61 : vector<32x32xf32>
    %cst_14 = arith.constant dense<0.000000e+00> : vector<32x32xf32>
    %63 = tpu.matmul %62, %6, %cst_14 {dimension_numbers = #tpu.dot_dimension_numbers<[1], [0], [0], [1], [0, 0, 1, 1], [], []>} : vector<32x32xf32>, vector<32x32xf32>, vector<32x32xf32> -> vector<32x32xf32>
    %64 = vector.broadcast %7 : vector<1x32xf32> to vector<32x32xf32>
    %65 = arith.addf %63, %64 : vector<32x32xf32>
    %66 = arith.mulf %65, %65 : vector<32x32xf32>
    %cst_15 = arith.constant dense<0.000000e+00> : vector<32xf32>
    %67 = vector.multi_reduction <add>, %66, %cst_15 [1] : vector<32x32xf32> to vector<32xf32>
    %68 = vector.shape_cast %67 : vector<32xf32> to vector<32x1xf32>
    %cst_16 = arith.constant 9.99999996E-13 : f32
    %69 = vector.broadcast %cst_16 : f32 to vector<32x1xf32>
    %70 = arith.addf %68, %69 : vector<32x1xf32>
    %71 = math.rsqrt %70 : vector<32x1xf32>
    %72 = vector.broadcast %71 : vector<32x1xf32> to vector<32x32xf32>
    %73 = arith.mulf %65, %72 : vector<32x32xf32>
    %74 = vector.extract_strided_slice %3 {offsets = [0, 6], sizes = [32, 3], strides = [1, 1]} : vector<32x12xf32> to vector<32x3xf32>
    %75 = vector.extract_strided_slice %74 {offsets = [0, 0], sizes = [32, 1], strides = [1, 1]} : vector<32x3xf32> to vector<32x1xf32>
    %76 = vector.extract_strided_slice %4 {offsets = [0, 0], sizes = [1, 32], strides = [1, 1]} : vector<3x32xf32> to vector<1x32xf32>
    %77 = vector.broadcast %75 : vector<32x1xf32> to vector<32x32xf32>
    %78 = vector.broadcast %76 : vector<1x32xf32> to vector<32x32xf32>
    %79 = arith.mulf %77, %78 : vector<32x32xf32>
    %80 = vector.extract_strided_slice %74 {offsets = [0, 1], sizes = [32, 1], strides = [1, 1]} : vector<32x3xf32> to vector<32x1xf32>
    %81 = vector.extract_strided_slice %4 {offsets = [1, 0], sizes = [1, 32], strides = [1, 1]} : vector<3x32xf32> to vector<1x32xf32>
    %82 = vector.broadcast %80 : vector<32x1xf32> to vector<32x32xf32>
    %83 = vector.broadcast %81 : vector<1x32xf32> to vector<32x32xf32>
    %84 = arith.mulf %82, %83 : vector<32x32xf32>
    %85 = arith.addf %79, %84 : vector<32x32xf32>
    %86 = vector.extract_strided_slice %74 {offsets = [0, 2], sizes = [32, 1], strides = [1, 1]} : vector<32x3xf32> to vector<32x1xf32>
    %87 = vector.extract_strided_slice %4 {offsets = [2, 0], sizes = [1, 32], strides = [1, 1]} : vector<3x32xf32> to vector<1x32xf32>
    %88 = vector.broadcast %86 : vector<32x1xf32> to vector<32x32xf32>
    %89 = vector.broadcast %87 : vector<1x32xf32> to vector<32x32xf32>
    %90 = arith.mulf %88, %89 : vector<32x32xf32>
    %91 = arith.addf %85, %90 : vector<32x32xf32>
    %92 = vector.broadcast %5 : vector<1x32xf32> to vector<32x32xf32>
    %93 = arith.addf %91, %92 : vector<32x32xf32>
    %cst_17 = arith.constant 0.000000e+00 : f32
    %94 = vector.broadcast %cst_17 : f32 to vector<32x32xf32>
    %95 = arith.maximumf %93, %94 : vector<32x32xf32>
    %cst_18 = arith.constant dense<0.000000e+00> : vector<32x32xf32>
    %96 = tpu.matmul %95, %6, %cst_18 {dimension_numbers = #tpu.dot_dimension_numbers<[1], [0], [0], [1], [0, 0, 1, 1], [], []>} : vector<32x32xf32>, vector<32x32xf32>, vector<32x32xf32> -> vector<32x32xf32>
    %97 = vector.broadcast %7 : vector<1x32xf32> to vector<32x32xf32>
    %98 = arith.addf %96, %97 : vector<32x32xf32>
    %99 = arith.mulf %98, %98 : vector<32x32xf32>
    %cst_19 = arith.constant dense<0.000000e+00> : vector<32xf32>
    %100 = vector.multi_reduction <add>, %99, %cst_19 [1] : vector<32x32xf32> to vector<32xf32>
    %101 = vector.shape_cast %100 : vector<32xf32> to vector<32x1xf32>
    %cst_20 = arith.constant 9.99999996E-13 : f32
    %102 = vector.broadcast %cst_20 : f32 to vector<32x1xf32>
    %103 = arith.addf %101, %102 : vector<32x1xf32>
    %104 = math.rsqrt %103 : vector<32x1xf32>
    %105 = vector.broadcast %104 : vector<32x1xf32> to vector<32x32xf32>
    %106 = arith.mulf %98, %105 : vector<32x32xf32>
    %107 = vector.extract_strided_slice %3 {offsets = [0, 9], sizes = [32, 3], strides = [1, 1]} : vector<32x12xf32> to vector<32x3xf32>
    %108 = vector.extract_strided_slice %107 {offsets = [0, 0], sizes = [32, 1], strides = [1, 1]} : vector<32x3xf32> to vector<32x1xf32>
    %109 = vector.extract_strided_slice %4 {offsets = [0, 0], sizes = [1, 32], strides = [1, 1]} : vector<3x32xf32> to vector<1x32xf32>
    %110 = vector.broadcast %108 : vector<32x1xf32> to vector<32x32xf32>
    %111 = vector.broadcast %109 : vector<1x32xf32> to vector<32x32xf32>
    %112 = arith.mulf %110, %111 : vector<32x32xf32>
    %113 = vector.extract_strided_slice %107 {offsets = [0, 1], sizes = [32, 1], strides = [1, 1]} : vector<32x3xf32> to vector<32x1xf32>
    %114 = vector.extract_strided_slice %4 {offsets = [1, 0], sizes = [1, 32], strides = [1, 1]} : vector<3x32xf32> to vector<1x32xf32>
    %115 = vector.broadcast %113 : vector<32x1xf32> to vector<32x32xf32>
    %116 = vector.broadcast %114 : vector<1x32xf32> to vector<32x32xf32>
    %117 = arith.mulf %115, %116 : vector<32x32xf32>
    %118 = arith.addf %112, %117 : vector<32x32xf32>
    %119 = vector.extract_strided_slice %107 {offsets = [0, 2], sizes = [32, 1], strides = [1, 1]} : vector<32x3xf32> to vector<32x1xf32>
    %120 = vector.extract_strided_slice %4 {offsets = [2, 0], sizes = [1, 32], strides = [1, 1]} : vector<3x32xf32> to vector<1x32xf32>
    %121 = vector.broadcast %119 : vector<32x1xf32> to vector<32x32xf32>
    %122 = vector.broadcast %120 : vector<1x32xf32> to vector<32x32xf32>
    %123 = arith.mulf %121, %122 : vector<32x32xf32>
    %124 = arith.addf %118, %123 : vector<32x32xf32>
    %125 = vector.broadcast %5 : vector<1x32xf32> to vector<32x32xf32>
    %126 = arith.addf %124, %125 : vector<32x32xf32>
    %cst_21 = arith.constant 0.000000e+00 : f32
    %127 = vector.broadcast %cst_21 : f32 to vector<32x32xf32>
    %128 = arith.maximumf %126, %127 : vector<32x32xf32>
    %cst_22 = arith.constant dense<0.000000e+00> : vector<32x32xf32>
    %129 = tpu.matmul %128, %6, %cst_22 {dimension_numbers = #tpu.dot_dimension_numbers<[1], [0], [0], [1], [0, 0, 1, 1], [], []>} : vector<32x32xf32>, vector<32x32xf32>, vector<32x32xf32> -> vector<32x32xf32>
    %130 = vector.broadcast %7 : vector<1x32xf32> to vector<32x32xf32>
    %131 = arith.addf %129, %130 : vector<32x32xf32>
    %132 = arith.mulf %131, %131 : vector<32x32xf32>
    %cst_23 = arith.constant dense<0.000000e+00> : vector<32xf32>
    %133 = vector.multi_reduction <add>, %132, %cst_23 [1] : vector<32x32xf32> to vector<32xf32>
    %134 = vector.shape_cast %133 : vector<32xf32> to vector<32x1xf32>
    %cst_24 = arith.constant 9.99999996E-13 : f32
    %135 = vector.broadcast %cst_24 : f32 to vector<32x1xf32>
    %136 = arith.addf %134, %135 : vector<32x1xf32>
    %137 = math.rsqrt %136 : vector<32x1xf32>
    %138 = vector.broadcast %137 : vector<32x1xf32> to vector<32x32xf32>
    %139 = arith.mulf %131, %138 : vector<32x32xf32>
    %140 = tpu.concatenate %40, %73, %106, %139 in 1 : vector<32x32xf32>, vector<32x32xf32>, vector<32x32xf32>, vector<32x32xf32> -> vector<32x128xf32>
    %c0_25 = arith.constant 0 : index
    %c0_26 = arith.constant 0 : index
    %141 = vector.load %arg6[%c0_25, %c0_26] : memref<32x128xf32, #tpu.memory_space<vmem>>, vector<32x128xf32>
    tpu.vector_store %arg6[%c0_25, %c0_26], %140 {strides = array<i32>} : memref<32x128xf32, #tpu.memory_space<vmem>>, vector<32x128xf32>,
    return
  }
  func.func @transform_0(%arg0: i32) -> (i32, i32) {
    %c0_i32 = arith.constant 0 : i32
    %c0_i32_0 = arith.constant 0 : i32
    return %arg0, %c0_i32 : i32, i32
  }
  func.func @transform_1(%arg0: i32) -> (i32, i32) {
    %c0_i32 = arith.constant 0 : i32
    %c0_i32_0 = arith.constant 0 : i32
    %c0_i32_1 = arith.constant 0 : i32
    return %c0_i32, %c0_i32_0 : i32, i32
  }
  func.func @transform_2(%arg0: i32) -> (i32, i32) {
    %c0_i32 = arith.constant 0 : i32
    %c0_i32_0 = arith.constant 0 : i32
    %c0_i32_1 = arith.constant 0 : i32
    return %c0_i32, %c0_i32_0 : i32, i32
  }
  func.func @transform_3(%arg0: i32) -> (i32, i32) {
    %c0_i32 = arith.constant 0 : i32
    %c0_i32_0 = arith.constant 0 : i32
    %c0_i32_1 = arith.constant 0 : i32
    return %c0_i32, %c0_i32_0 : i32, i32
  }
  func.func @transform_4(%arg0: i32) -> (i32, i32) {
    %c0_i32 = arith.constant 0 : i32
    %c0_i32_0 = arith.constant 0 : i32
    %c0_i32_1 = arith.constant 0 : i32
    return %c0_i32, %c0_i32_0 : i32, i32
  }
  func.func @transform_5(%arg0: i32) -> (i32, i32) {
    %c0_i32 = arith.constant 0 : i32
    %c0_i32_0 = arith.constant 0 : i32
    return %arg0, %c0_i32 : i32, i32
  }
}

</mosaic_0001>

<bundles_post_ra>
// kernel: tpu_custom_call.1
= control target key start
LH: loop header
LB: loop body
LE: loop exit
PB: predicated region body
PF: predicated region fallthrough
CT: control target
= control target key end

     0   :  { %10 = vsyncpa [#allocation3], 0  ;;  %s2046_s0 = inlined_call_operand.vmem [shape: f32[64,12], index: 0, kind: input, shape index: {}]   ;;  %s2047_s1 = inlined_call_operand.vmem [shape: f32[3,32], index: 1, kind: input, shape index: {}]   ;;  %s2048_s2 = inlined_call_operand.vmem [shape: f32[1,32], index: 2, kind: input, shape index: {}]   ;;  %s2049_s3 = inlined_call_operand.vmem [shape: f32[32,32], index: 3, kind: input, shape index: {}]   ;;  %s2050_s4 = inlined_call_operand.vmem [shape: f32[1,32], index: 4, kind: input, shape index: {}]   ;;  %s2051_s5 = inlined_call_operand.hbm [shape: f32[64,128], index: 5, kind: output, shape index: {}]  }
   0x1   :  { %12 = vsyncpa [#allocation3 + $0x1], 0  ;;  %s1610_s18 = smov 0   ;;  %s1612_s19 = smov 0  }
   0x2   :  { %s1614_s20 = smov 0   ;;  %s1616_s21 = smov 0  }
   0x3 LB: > { %s1631_s22 = sadd.s32 4294967295, %s1560_s21   ;;  %s1221_s23 = sadd.s32 4294967294, %s1560_s21   ;;  %s1560_s21 = sphi %s1616_s21, %s2057_s21   ;;  %s1556_s20 = sphi %s1614_s20, %s2056_s20   ;;  %s1552_s19 = sphi %s1612_s19, %s2055_s19   ;;  %s1548_s18 = sphi %s1610_s18, %s2054_s18  }
   0x4   : > { %s1635_s24 = sadd.s32 1, %s1560_s21   ;;  %s135_s25 = sadd.s32 1, %s1556_s20 }
   0x5   : > { %s132_s26 = ssub.s32 %s1560_s21, %s1635_s24  ;;  %p145_p0 = scmp.ne.s32.totalorder %s1556_s20, %s1552_s19 }
   0x6   : > { %p133_p1 = scmp.eq.s32.totalorder %s132_s26, 0  ;;  %p146_p2 = scmp.eq.s32.totalorder %s1631_s22, 1 }
   0x7   : > { %p151_p3 = scmp.ne.s32.totalorder %s1552_s19, %s1548_s18  ;;  %p152_p4 = scmp.eq.s32.totalorder %s1221_s23, 1 }
   0x8   : > { %s1646_s27 = scalar_select %p133_p1, %s1556_s20, %s135_s25  }
   0x9   : > { %p1648_p5 = por %p146_p2, %p145_p0  ;;  %p1652_p6 = por %p152_p4, %p151_p3 }
   0xa   : > { %p1224_p7 = scmp.ge.s32.totalorder %s1560_s21, 1  ;;  %p191_p8 = scmp.lt.s32.totalorder %s1560_s21, 3 }
   0xc   : > { %p192_p9 = pnand %p1224_p7, %p191_p8 }
   0xd   : > { %s1226_s30 = sshll.u32 (!%p192_p9), %s1631_s22, 2  ;;  %v1562_v0 = vmov (!%p192_p9), 0   ;;  %v1563_v7 = vmov (!%p192_p9), 1   ;;  %v1564_v8 = vmov (!%p192_p9), 4   ;;  %v1565_v10 = vmov (!%p192_p9), 3   ;;  %v241_v17 = vld [vmem:[%s2049_s3] sm:$0xff] (!%p192_p9) }
   0xe   : > { %195 = sbr.rel (%p192_p9) target bundleno = 811 (0x32b), region = 40  ;;  %1429 = vset.pattern.permute.xlu1 (!%p192_p9), %v1562_v0  ;;  %1428 = vset.pattern.permute.xlu0 (!%p192_p9), %v1562_v0  ;;  %p220_p10 = scmp.lt.s32.totalorder (!%p192_p9), %s1226_s30, 7  ;;  %v1566_v13 = vmov (!%p192_p9), 2   ;;  %v242_v18 = vld [vmem:[%s2049_s3 + $0x8] sm:$0xff] (!%p192_p9)  ;;  %v243_v20 = vld [vmem:[%s2049_s3 + $0x10] sm:$0xff] (!%p192_p9)  ;;  %v244_v21 = vld [vmem:[%s2049_s3 + $0x18] sm:$0xff] (!%p192_p9)  ;;  %v266_v30 = vlaneseq (!%p192_p9) }
   0xf   : > { %v1690_v19 = vpack.c.bf16 (!%p192_p9), %v242_v18, %v241_v17  ;;  %v1703_v22 = vpack.c.bf16 (!%p192_p9), %v244_v21, %v243_v20  ;;  %v1567_v23 = vmov (!%p192_p9), 5   ;;  %v1568_v24 = vmov (!%p192_p9), 6   ;;  %v239_v37 = vld [vmem:[%s2047_s1] sm:$0x7] (!%p192_p9)  ;;  %s1574_s8 = smov (!%p192_p9), 32   ;;  %s1576_s10 = smov (!%p192_p9), 96  }
  0x10   : > { %v1569_v25 = vmov (!%p192_p9), 10   ;;  %v1570_v26 = vmov (!%p192_p9), 7   ;;  %v1571_v27 = vmov (!%p192_p9), 8   ;;  %v1572_v28 = vmov (!%p192_p9), 11   ;;  %v1766_v52 = vld [vmem:[%s2048_s2] ss:$0 sm:$0xff] (!%p192_p9) }
  0x11   : > { %1341 = vmatprep.subr.bf16.mxu0 (!%p192_p9), %v1690_v19  ;;  %1349 = vmatprep.subr.bf16.mxu1 (!%p192_p9), %v1690_v19  ;;  %v1573_v29 = vmov (!%p192_p9), 9   ;;  %v267_v33 = vshrl.u32 (!%p192_p9), %v266_v30, 7  ;;  %vm350_vm0 = vcmask (!%p192_p9), 261120   ;;  %s216_s11 = sand.u32 (!%p192_p9), 1, %s1552_s19   ;;  %vm1131_vm1 = vcmask (!%p192_p9), 523264   ;;  %s1251_s15 = sshll.u32 (!%p192_p9), %s1631_s22, 9 }
  0x12   : > { %1343 = vmatpush3.bf16.msra.mxu0 (!%p192_p9), %v1690_v19  ;;  %1351 = vmatpush3.bf16.msra.mxu1 (!%p192_p9), %v1690_v19  ;;  %s1225_s12 = sshll.u32 (!%p192_p9), %s216_s11, 5  ;;  %vm1136_vm2 = vcmask (!%p192_p9), 785408   ;;  %s1998_s23 = scalar_lea.hbm (!%p192_p9), %s2051_s5, %s1251_s15 }
  0x13   : > { %1345 = vmatprep.subr.bf16.mxu0 (!%p192_p9), %v1703_v22  ;;  %1353 = vmatprep.subr.bf16.mxu1 (!%p192_p9), %v1703_v22  ;;  %v268_v36 = vsub.s32 (!%p192_p9), 0, %v267_v33  ;;  %v320_v38 = vsub.s32 (!%p192_p9), 2, %v267_v33  ;;  %v292_v39 = vsub.s32 (!%p192_p9), 1, %v267_v33  ;;  %s218_s13 = scalar_lea.vmem (!%p192_p9), [#allocation2], %s1225_s12  ;;  %s2005_s22 = scalar_lea.sflag (!%p192_p9), [#allocation3], %s216_s11 }
  0x14   : > { %s1159_s14 = sshll.u32 (!%p192_p9), %s218_s13, 4  ;;  %s1577_s26 = smov (!%p192_p9), [#allocation2]   ;;  %s1992_s14 = int_to_ptr.vmem [resolvable:$true] %s1159_s14 }
  0x15   : > { %s2059_s30 = smov (!%p220_p10, %s1226_s30), 7  ;;  %v1753_v42 = vrot.slane %v239_v37, %v268_v36  ;;  %v1756_v43 = vrot.slane %v239_v37, %v320_v38  ;;  %v1759_v45 = vrot.slane %v239_v37, %v292_v39  ;;  %s1498_s25 = scalar_lea.vmem %s1992_s14, 512 }
  0x16   : > { %s1227_s6 = sshll.u32 %s2059_s30, 3  ;;  %1347 = vmatpush3.bf16.msra.mxu0 %v1703_v22  ;;  %1355 = vmatpush3.bf16.msra.mxu1 %v1703_v22  ;;  %p1499_p11 = scmp.ne.s32.totalorder %s1992_s14, %s1498_s25 }
  0x17   : > { %s223_s9 = scalar_lea.vmem %s2046_s0, %s1227_s6  ;;  %1365 = vmatprep.subr.bf16.mxu1 %v1690_v19  ;;  %1357 = vmatprep.subr.bf16.mxu0 %v1690_v19  ;;  %s1502_s30 = sshll.u32 %s1577_s26, 4  ;;  %s1503_s30 = int_to_ptr.vmem [resolvable:$false] %s1502_s30 }
  0x18   : > { %v227_v1 = vld [vmem:[%s223_s9 + $0x8] sm:$0xff]  ;;  %v226_v2 = vld [vmem:[%s223_s9] sm:$0xff]  ;;  %v229_v9 = vld [vmem:[%s223_s9 + $0x18] sm:$0xff]  ;;  %p1500_p12 = pnand %p1499_p11, %p1648_p5  ;;  %s1504_s6 = scalar_lea.vmem %s1503_s30, 1024 }
  0x19   : > { %v232_v3 = vmul.f32 50.0, %v227_v1  ;;  %v231_v4 = vmul.f32 50.0, %v226_v2  ;;  %v234_v11 = vmul.f32 50.0, %v229_v9  ;;  %v228_v12 = vld [vmem:[%s223_s9 + $0x10] sm:$0xff]  ;;  %s1575_s9 = smov 64   ;;  %p1505_p0 = scmp.lt.s32.totalorder %s1992_s14, %s1503_s30 }
  0x1a   : > { %v233_v15 = vmul.f32 50.0, %v228_v12  ;;  %p1501_p13 = pneg %p1500_p12  ;;  %p1506_p1 = scmp.lt.s32.totalorder %s1504_s6, %s1498_s25 }
  0x1b   : > { %v1664_v5 = vfloor.f32 %v232_v3  ;;  %v1666_v6 = vfloor.f32 %v231_v4  ;;  %v1676_v14 = vfloor.f32 %v234_v11 }
  0x1c   : > { %v1680_v16 = vfloor.f32 %v233_v15  ;;  %p1507_p2 = por %p1506_p1, %p1505_p0 }
  0x1d   : > { %253 = vperm.xlu1 %1429, %v1664_v5   ;;  %248 = vperm.xlu0 %1428, %v1666_v6  }
  0x1e   : > { %p1508_p3 = pnand %p1507_p2, %p1501_p13 }
  0x21   : > { %1430 = vset.pattern.permute.xlu1 %v1563_v7  ;;  %1432 = vset.pattern.permute.xlu0 %v1564_v8 }
  0x22   : > { %279 = vperm.xlu1 %1430, %v1664_v5   ;;  %497 = vperm.xlu0 %1432, %v1666_v6  }
  0x26   : > { %1431 = vset.pattern.permute.xlu1 %v1565_v10  ;;  %501 = vperm.xlu0 %1432, %v1664_v5  }
  0x27   : > { %477 = vperm.xlu1 %1431, %v1666_v6  }
  0x2a   : > { %1435 = vset.pattern.permute.xlu0 %v1563_v7 }
  0x2b   : > { %1433 = vset.pattern.permute.xlu1 %v1566_v13  ;;  %275 = vperm.xlu0 %1435, %v1666_v6  }
  0x2c   : > { %303 = vperm.xlu1 %1433, %v1666_v6  }
  0x2f   : > { %287 = vperm.xlu0 %1435, %v1676_v14  }
  0x30   : > { %1434 = vset.pattern.permute.xlu1 %v1565_v10 }
  0x31   : > { %481 = vperm.xlu1 %1434, %v1664_v5  }
  0x33   : > { %1442 = vset.pattern.permute.xlu0 %v1566_v13 }
  0x34   : > { %311 = vperm.xlu0 %1442, %v1680_v16  }
  0x35   : > { %1436 = vset.pattern.permute.xlu1 %v1566_v13 }
  0x36   : > { %307 = vperm.xlu1 %1436, %v1664_v5  }
  0x38   : > { %315 = vperm.xlu0 %1442, %v1676_v14  }
  0x3a   : > { %1437 = vset.pattern.permute.xlu1 %v1562_v0 }
  0x3b   : > { %258 = vperm.xlu1 %1437, %v1680_v16  }
  0x3c   : > { %1445 = vset.pattern.permute.xlu0 %v1567_v23 }
  0x3d   : > { %521 = vperm.xlu0 %1445, %v1666_v6  }
  0x3f   : > { %1438 = vset.pattern.permute.xlu1 %v1563_v7 }
  0x40   : > { %283 = vperm.xlu1 %1438, %v1680_v16  }
  0x41   : > { %525 = vperm.xlu0 %1445, %v1664_v5  }
  0x44   : > { %1439 = vset.pattern.permute.xlu1 %v1562_v0 }
  0x45   : > { %263 = vperm.xlu1 %1439, %v1676_v14   ;;  %533 = vperm.xlu0 %1445, %v1676_v14  }
  0x49   : > { %1440 = vset.pattern.permute.xlu1 %v1565_v10  ;;  %1449 = vset.pattern.permute.xlu0 %v1568_v24 }
  0x4a   : > { %485 = vperm.xlu1 %1440, %v1680_v16   ;;  %682 = vperm.xlu0 %1449, %v1664_v5  }
  0x4e   : > { %1441 = vset.pattern.permute.xlu1 %v1564_v8  ;;  %1451 = vset.pattern.permute.xlu0 %v1569_v25 }
  0x4f   : > { %505 = vperm.xlu1 %1441, %v1680_v16   ;;  %899 = vperm.xlu0 %1451, %v1666_v6  }
  0x53   : > { %1443 = vset.pattern.permute.xlu1 %v1565_v10  ;;  %903 = vperm.xlu0 %1451, %v1664_v5  }
  0x54   : > { %489 = vperm.xlu1 %1443, %v1676_v14  }
  0x57   : > { %1458 = vset.pattern.permute.xlu0 %v1570_v26 }
  0x58   : > { %1444 = vset.pattern.permute.xlu1 %v1564_v8  ;;  %710 = vperm.xlu0 %1458, %v1676_v14  }
  0x59   : > { %509 = vperm.xlu1 %1444, %v1676_v14  }
  0x5c   : > { %1461 = vset.pattern.permute.xlu0 %v1571_v27 }
  0x5d   : > { %1446 = vset.pattern.permute.xlu1 %v1567_v23  ;;  %730 = vperm.xlu0 %1461, %v1680_v16  }
  0x5e   : > { %529 = vperm.xlu1 %1446, %v1680_v16  }
  0x61   : > { %734 = vperm.xlu0 %1461, %v1676_v14  }
  0x62   : > { %1447 = vset.pattern.permute.xlu1 %v1568_v24 }
  0x63   : > { %678 = vperm.xlu1 %1447, %v1666_v6  }
  0x65   : > { %1464 = vset.pattern.permute.xlu0 %v1572_v28 }
  0x66   : > { %923 = vperm.xlu0 %1464, %v1666_v6  }
  0x67   : > { %1448 = vset.pattern.permute.xlu1 %v1570_v26 }
  0x68   : > { %698 = vperm.xlu1 %1448, %v1666_v6  }
  0x6a   : > { %927 = vperm.xlu0 %1464, %v1664_v5  }
  0x6c   : > { %702 = vperm.xlu1 %1448, %v1664_v5  }
  0x6e   : > { %935 = vperm.xlu0 %1464, %v1676_v14  }
  0x70   : > { %1450 = vset.pattern.permute.xlu1 %v1573_v29 }
  0x71   : > { %879 = vperm.xlu1 %1450, %v1666_v6  }
  0x75   : > { %1452 = vset.pattern.permute.xlu1 %v1571_v27 }
  0x76   : > { %722 = vperm.xlu1 %1452, %v1666_v6  }
  0x7a   : > { %1453 = vset.pattern.permute.xlu1 %v1573_v29 }
  0x7b   : > { %883 = vperm.xlu1 %1453, %v1664_v5  }
  0x7f   : > { %1454 = vset.pattern.permute.xlu1 %v1571_v27 }
  0x80   : > { %726 = vperm.xlu1 %1454, %v1664_v5  }
  0x84   : > { %1455 = vset.pattern.permute.xlu1 %v1568_v24 }
  0x85   : > { %686 = vperm.xlu1 %1455, %v1680_v16  }
  0x89   : > { %1456 = vset.pattern.permute.xlu1 %v1570_v26 }
  0x8a   : > { %706 = vperm.xlu1 %1456, %v1680_v16  }
  0x8e   : > { %1457 = vset.pattern.permute.xlu1 %v1568_v24 }
  0x8f   : > { %690 = vperm.xlu1 %1457, %v1676_v14  }
  0x93   : > { %1459 = vset.pattern.permute.xlu1 %v1573_v29 }
  0x94   : > { %887 = vperm.xlu1 %1459, %v1680_v16  }
  0x98   : > { %1460 = vset.pattern.permute.xlu1 %v1569_v25 }
  0x99   : > { %907 = vperm.xlu1 %1460, %v1680_v16  }
  0x9c   : > { %v254_v31 = vpop.permute.xlu1 %253  ;;  %v249_v32 = vpop.permute.xlu0 %248 }
  0x9d   : > { %1462 = vset.pattern.permute.xlu1 %v1573_v29  ;;  %v270_v44 = vmul.f32 %v1753_v42, %v249_v32  ;;  %v271_v59 = vmul.f32 %v1753_v42, %v254_v31 }
  0x9e   : > { %891 = vperm.xlu1 %1462, %v1676_v14  }
  0xa1   : > { %v280_v34 = vpop.permute.xlu1 %279  ;;  %v498_v35 = vpop.permute.xlu0 %497 }
  0xa2   : > { %1463 = vset.pattern.permute.xlu1 %v1569_v25  ;;  %v295_v56 = vmul.f32 %v1759_v45, %v280_v34  ;;  %v512_v1 = vmul.f32 %v498_v35, %v1759_v45 }
  0xa3   : > { %911 = vperm.xlu1 %1463, %v1676_v14  }
  0xa4   : > { %v299_v61 = vadd.f32 %v295_v56, %v271_v59 }
  0xa5   : > { %v502_v40 = vpop.permute.xlu0 %501 }
  0xa6   : > { %v478_v41 = vpop.permute.xlu1 %477  ;;  %v513_v8 = vmul.f32 %v502_v40, %v1759_v45 }
  0xa7   : > { %1465 = vset.pattern.permute.xlu1 %v1572_v28  ;;  %v492_v2 = vmul.f32 %v478_v41, %v1753_v42 }
  0xa8   : > { %931 = vperm.xlu1 %1465, %v1680_v16  }
  0xa9   : > { %v516_v7 = vadd.f32 %v512_v1, %v492_v2 }
  0xaa   : > { %v276_v46 = vpop.permute.xlu0 %275 }
  0xab   : > { %v294_v47 = vmul.f32 %v1759_v45, %v276_v46  ;;  %v304_v48 = vpop.permute.xlu1 %303 }
  0xac   : > { %v322_v49 = vmul.f32 %v1756_v43, %v304_v48 }
  0xad   : > { %v298_v50 = vadd.f32 %v294_v47, %v270_v44 }
  0xae   : > { %v288_v51 = vpop.permute.xlu0 %287 }
  0xaf   : > { %v326_v53 = vadd.f32 %v322_v49, %v298_v50  ;;  %v297_v23 = vmul.f32 %v1759_v45, %v288_v51 }
  0xb0   : > { %v482_v54 = vpop.permute.xlu1 %481 }
  0xb1   : > { %v336_v55 = vadd.f32 %v1766_v52, %v326_v53  ;;  %v493_v9 = vmul.f32 %v482_v54, %v1753_v42 }
  0xb3   : > { %v312_v57 = vpop.permute.xlu0 %311  ;;  %v340_v58 = vmax.f32 %v336_v55, 0.0  ;;  %v517_v17 = vadd.f32 %v513_v8, %v493_v9 }
  0xb4   : > { %v324_v13 = vmul.f32 %v1756_v43, %v312_v57 }
  0xb5   : > { %v308_v60 = vpop.permute.xlu1 %307  ;;  %1292 = vmatprep.mubr.msk.f32.mxu0 %vm350_vm0, %v340_v58 }
  0xb6   : > { %v323_v62 = vmul.f32 %v1756_v43, %v308_v60 }
  0xb7   : > { %v316_v63 = vpop.permute.xlu0 %315 }
  0xb8   : > { %v327_v0 = vadd.f32 %v323_v62, %v299_v61  ;;  %v325_v29 = vmul.f32 %v1756_v43, %v316_v63 }
  0xba   : > { %v337_v3 = vadd.f32 %v1766_v52, %v327_v0  ;;  %v259_v4 = vpop.permute.xlu1 %258 }
  0xbb   : > { %v272_v14 = vmul.f32 %v1753_v42, %v259_v4 }
  0xbc   : > { %v341_v5 = vmax.f32 %v337_v3, 0.0  ;;  %v522_v6 = vpop.permute.xlu0 %521 }
  0xbd   : > { %v536_v10 = vmul.f32 %v522_v6, %v1756_v43 }
  0xbe   : > { %1293 = vmatmul.mubr.msk.f32.vlgmr.msra.gmra.mrb[0].mxu0 %vm350_vm0, %v341_v5 }
  0xbf   : > { %v540_v11 = vadd.f32 %v536_v10, %v516_v7  ;;  %v284_v12 = vpop.permute.xlu1 %283  ;;  %1359 = vmatpush3.bf16.msra.mxu0 %v1690_v19 }
  0xc0   : > { %v296_v15 = vmul.f32 %v1759_v45, %v284_v12  ;;  %v526_v16 = vpop.permute.xlu0 %525  ;;  %1361 = vmatprep.subr.bf16.mxu0 %v1703_v22 }
  0xc1   : > { %v537_v18 = vmul.f32 %v526_v16, %v1756_v43  ;;  %v544_v20 = vadd.f32 %v1766_v52, %v540_v11 }
  0xc2   : > { %v300_v21 = vadd.f32 %v296_v15, %v272_v14 }
  0xc3   : > { %v541_v24 = vadd.f32 %v537_v18, %v517_v17  ;;  %v548_v25 = vmax.f32 %v544_v20, 0.0  ;;  %1363 = vmatpush3.bf16.msra.mxu0 %v1703_v22 }
  0xc4   : > { %v328_v26 = vadd.f32 %v324_v13, %v300_v21  ;;  %v264_v27 = vpop.permute.xlu1 %263  ;;  %v534_v28 = vpop.permute.xlu0 %533 }
  0xc5   : > { %v545_v30 = vadd.f32 %v1766_v52, %v541_v24  ;;  %v273_v31 = vmul.f32 %v1753_v42, %v264_v27  ;;  %1306 = vmatprep.mubr.msk.f32.mxu1 %vm350_vm0, %v548_v25  ;;  %v539_v50 = vmul.f32 %v534_v28, %v1756_v43 }
  0xc6   : > { %v338_v32 = vadd.f32 %v1766_v52, %v328_v26 }
  0xc7   : > { %v549_v33 = vmax.f32 %v545_v30, 0.0  ;;  %v301_v34 = vadd.f32 %v297_v23, %v273_v31 }
  0xc8   : > { %v342_v35 = vmax.f32 %v338_v32, 0.0 }
  0xc9   : > { %v329_v36 = vadd.f32 %v325_v29, %v301_v34  ;;  %v486_v37 = vpop.permute.xlu1 %485  ;;  %1307 = vmatmul.mubr.msk.f32.vlgmr.msra.gmra.mrb[0].mxu1 %vm350_vm0, %v549_v33  ;;  %v683_v38 = vpop.permute.xlu0 %682 }
  0xca   : > { %1295 = vmatprep.mubr.msk.f32.mxu0 %vm350_vm0, %v342_v35  ;;  %1367 = vmatpush3.bf16.msra.mxu1 %v1690_v19  ;;  %v494_v54 = vmul.f32 %v486_v37, %v1753_v42  ;;  %v694_v28 = vmul.f32 %v683_v38, %v1753_v42 }
  0xcb   : > { %v339_v39 = vadd.f32 %v1766_v52, %v329_v36  ;;  %1369 = vmatprep.subr.bf16.mxu1 %v1703_v22 }
  0xcd   : > { %v343_v40 = vmax.f32 %v339_v39, 0.0 }
  0xce   : > { %v506_v41 = vpop.permute.xlu1 %505  ;;  %1371 = vmatpush3.bf16.msra.mxu1 %v1703_v22  ;;  %v900_v44 = vpop.permute.xlu0 %899 }
  0xcf   : > { %1296 = vmatmul.mubr.msk.f32.gmra.mrb[2].mxu0 %vm350_vm0, %v343_v40  ;;  %v514_v51 = vmul.f32 %v506_v41, %v1759_v45  ;;  %v914_v6 = vmul.f32 %v900_v44, %v1759_v45 }
  0xd1   : > { %v518_v57 = vadd.f32 %v514_v51, %v494_v54 }
  0xd2   : > { %v904_v47 = vpop.permute.xlu0 %903 }
  0xd3   : > { %v490_v46 = vpop.permute.xlu1 %489  ;;  %v915_v21 = vmul.f32 %v904_v47, %v1759_v45 }
  0xd4   : > { %v495_v49 = vmul.f32 %v490_v46, %v1753_v42 }
  0xd7   : > { %v711_v55 = vpop.permute.xlu0 %710 }
  0xd8   : > { %v510_v48 = vpop.permute.xlu1 %509 }
  0xd9   : > { %v515_v19 = vmul.f32 %v510_v48, %v1759_v45 }
  0xdb   : > { %v519_v53 = vadd.f32 %v515_v19, %v495_v49 }
  0xdc   : > { %v731_v63 = vpop.permute.xlu0 %730 }
  0xdd   : > { %v543_v56 = vadd.f32 %v539_v50, %v519_v53  ;;  %v530_v22 = vpop.permute.xlu1 %529  ;;  %v739_v46 = vmul.f32 %v731_v63, %v1756_v43  ;;  %v716_v50 = vmul.f32 %v711_v55, %v1759_v45 }
  0xde   : > { %v538_v58 = vmul.f32 %v530_v22, %v1756_v43 }
  0xdf   : > { %v547_v60 = vadd.f32 %v1766_v52, %v543_v56 }
  0xe0   : > { %v542_v59 = vadd.f32 %v538_v58, %v518_v57  ;;  %v735_v3 = vpop.permute.xlu0 %734 }
  0xe1   : > { %v551_v1 = vmax.f32 %v547_v60, 0.0  ;;  %v740_v53 = vmul.f32 %v735_v3, %v1756_v43 }
  0xe2   : > { %v546_v61 = vadd.f32 %v1766_v52, %v542_v59  ;;  %v679_v62 = vpop.permute.xlu1 %678 }
  0xe3   : > { %v693_v12 = vmul.f32 %v679_v62, %v1753_v42 }
  0xe4   : > { %v550_v0 = vmax.f32 %v546_v61, 0.0 }
  0xe5   : > { %v924_v5 = vpop.permute.xlu0 %923 }
  0xe6   : > { %1309 = vmatprep.mubr.msk.f32.mxu1 %vm350_vm0, %v550_v0  ;;  %v938_v9 = vmul.f32 %v924_v5, %v1756_v43 }
  0xe7   : > { %v699_v2 = vpop.permute.xlu1 %698  ;;  %1310 = vmatmul.mubr.msk.f32.gmra.mrb[2].mxu1 %vm350_vm0, %v551_v1 }
  0xe8   : > { %v713_v10 = vmul.f32 %v699_v2, %v1759_v45 }
  0xe9   : > { %v928_v20 = vpop.permute.xlu0 %927 }
  0xea   : > { %v717_v15 = vadd.f32 %v713_v10, %v693_v12  ;;  %v939_v27 = vmul.f32 %v928_v20, %v1756_v43 }
  0xeb   : > { %v703_v4 = vpop.permute.xlu1 %702 }
  0xec   : > { %v714_v29 = vmul.f32 %v703_v4, %v1759_v45 }
  0xed   : > { %v936_v63 = vpop.permute.xlu0 %935 }
  0xee   : > { %v718_v34 = vadd.f32 %v714_v29, %v694_v28  ;;  %v941_v4 = vmul.f32 %v936_v63, %v1756_v43 }
  0xf0   : > { %v880_v7 = vpop.permute.xlu1 %879 }
  0xf1   : > { %v894_v8 = vmul.f32 %v880_v7, %v1753_v42 }
  0xf3   : > { %v918_v11 = vadd.f32 %v914_v6, %v894_v8 }
  0xf5   : > { %v942_v13 = vadd.f32 %v938_v9, %v918_v11  ;;  %v723_v14 = vpop.permute.xlu1 %722 }
  0xf6   : > { %v737_v16 = vmul.f32 %v723_v14, %v1756_v43 }
  0xf7   : > { %v946_v17 = vadd.f32 %v1766_v52, %v942_v13 }
  0xf8   : > { %v741_v18 = vadd.f32 %v737_v16, %v717_v15 }
  0xf9   : > { %v950_v23 = vmax.f32 %v946_v17, 0.0 }
  0xfa   : > { %v745_v24 = vadd.f32 %v1766_v52, %v741_v18  ;;  %v884_v25 = vpop.permute.xlu1 %883 }
  0xfb   : > { %v895_v26 = vmul.f32 %v884_v25, %v1753_v42  ;;  %1334 = vmatprep.mubr.msk.f32.mxu1 %vm350_vm0, %v950_v23 }
  0xfc   : > { %v749_v30 = vmax.f32 %v745_v24, 0.0 }
  0xfd   : > { %v919_v31 = vadd.f32 %v915_v21, %v895_v26 }
  0xfe   : > { %1320 = vmatprep.mubr.msk.f32.mxu0 %vm350_vm0, %v749_v30 }
  0xff   : > { %v943_v32 = vadd.f32 %v939_v27, %v919_v31  ;;  %v727_v33 = vpop.permute.xlu1 %726 }
 0x100   : > { %v738_v35 = vmul.f32 %v727_v33, %v1756_v43 }
 0x101   : > { %v947_v36 = vadd.f32 %v1766_v52, %v943_v32 }
 0x102   : > { %v742_v37 = vadd.f32 %v738_v35, %v718_v34 }
 0x103   : > { %v951_v39 = vmax.f32 %v947_v36, 0.0 }
 0x104   : > { %v746_v40 = vadd.f32 %v1766_v52, %v742_v37  ;;  %v687_v41 = vpop.permute.xlu1 %686 }
 0x105   : > { %1335 = vmatmul.mubr.msk.f32.vlgmr.msra.gmra.mrb[4].mxu1 %vm350_vm0, %v951_v39  ;;  %v695_v47 = vmul.f32 %v687_v41, %v1753_v42 }
 0x106   : > { %v750_v38 = vmax.f32 %v746_v40, 0.0 }
 0x108   : > { %1321 = vmatmul.mubr.msk.f32.vlgmr.msra.gmra.mrb[4].mxu0 %vm350_vm0, %v750_v38 }
 0x109   : > { %v707_v44 = vpop.permute.xlu1 %706 }
 0x10a   : > { %v715_v48 = vmul.f32 %v707_v44, %v1759_v45 }
 0x10c   : > { %v719_v49 = vadd.f32 %v715_v48, %v695_v47 }
 0x10e   : > { %v743_v19 = vadd.f32 %v739_v46, %v719_v49  ;;  %v691_v51 = vpop.permute.xlu1 %690 }
 0x10f   : > { %v696_v54 = vmul.f32 %v691_v51, %v1753_v42 }
 0x110   : > { %v747_v56 = vadd.f32 %v1766_v52, %v743_v19 }
 0x111   : > { %v720_v22 = vadd.f32 %v716_v50, %v696_v54 }
 0x112   : > { %v751_v57 = vmax.f32 %v747_v56, 0.0 }
 0x113   : > { %v744_v58 = vadd.f32 %v740_v53, %v720_v22  ;;  %v888_v59 = vpop.permute.xlu1 %887 }
 0x114   : > { %1323 = vmatprep.mubr.msk.f32.mxu0 %vm350_vm0, %v751_v57  ;;  %v896_v6 = vmul.f32 %v888_v59, %v1753_v42 }
 0x115   : > { %v748_v60 = vadd.f32 %v1766_v52, %v744_v58 }
 0x117   : > { %v752_v61 = vmax.f32 %v748_v60, 0.0 }
 0x118   : > { %v908_v62 = vpop.permute.xlu1 %907 }
 0x119   : > { %1324 = vmatmul.mubr.msk.f32.gmra.mrb[6].mxu0 %vm350_vm0, %v752_v61  ;;  %v916_v3 = vmul.f32 %v908_v62, %v1759_v45 }
 0x11b   : > { %v920_v9 = vadd.f32 %v916_v3, %v896_v6 }
 0x11d   : > { %v892_v55 = vpop.permute.xlu1 %891 }
 0x11e   : > { %v897_v1 = vmul.f32 %v892_v55, %v1753_v42  ;;  %v1854_v42 = vld [vmem:[%s2050_s4] ss:$0 sm:$0xff] }
 0x122   : > { %v912_v0 = vpop.permute.xlu1 %911 }
 0x123   : > { %v917_v2 = vmul.f32 %v912_v0, %v1759_v45 }
 0x125   : > { %v921_v5 = vadd.f32 %v917_v2, %v897_v1 }
 0x127   : > { %v945_v7 = vadd.f32 %v941_v4, %v921_v5  ;;  %v932_v8 = vpop.permute.xlu1 %931 }
 0x128   : > { %v940_v10 = vmul.f32 %v932_v8, %v1756_v43 }
 0x129   : > { %v949_v12 = vadd.f32 %v1766_v52, %v945_v7 }
 0x12a   : > { %v944_v11 = vadd.f32 %v940_v10, %v920_v9 }
 0x12b   : > { %v953_v15 = vmax.f32 %v949_v12, 0.0 }
 0x12c   : > { %v948_v13 = vadd.f32 %v1766_v52, %v944_v11 }
 0x12e   : > { %v952_v14 = vmax.f32 %v948_v13, 0.0 }
 0x130   : > { %1337 = vmatprep.mubr.msk.f32.mxu1 %vm350_vm0, %v952_v14 }
 0x131   : > { %1338 = vmatmul.mubr.msk.f32.gmra.mrb[6].mxu1 %vm350_vm0, %v953_v15 }
 0x191   : > { %v1294_v45 = vpop.f32.mrb[0].mxu0 }
 0x192   : > { %v1857_v16 = vadd.f32 %v1294_v45, %v1854_v42  ;;  %v429_v43 = vpop.f32.mrb[1].mxu0 }
 0x193   : > { %v1860_v17 = vadd.f32 %v1854_v42, %v429_v43 }
 0x194   : > { %v449_v52 = vmul.f32 %v1857_v16, %v1857_v16 }
 0x195   : > { %v448_v18 = vmul.f32 %v1860_v17, %v1860_v17 }
 0x196   : > { %v455_v20 = vsel %vm350_vm0, %v449_v52, 0.0 }
 0x197   : > { %456 = vadd.xlane.f32.xlu0 %v455_v20  ;;  %v452_v21 = vsel %vm350_vm0, %v448_v18, 0.0 }
 0x198   : > { %453 = vadd.xlane.f32.xlu1 %v452_v21 }
 0x19c   : > { %v1308_v23 = vpop.f32.mrb[0].mxu1 }
 0x19d   : > { %v1869_v24 = vadd.f32 %v1308_v23, %v1854_v42  ;;  %v630_v25 = vpop.f32.mrb[1].mxu1 }
 0x19e   : > { %v1872_v26 = vadd.f32 %v1854_v42, %v630_v25 }
 0x19f   : > { %v650_v27 = vmul.f32 %v1869_v24, %v1869_v24 }
 0x1a0   : > { %v649_v28 = vmul.f32 %v1872_v26, %v1872_v26 }
 0x1a1   : > { %v656_v29 = vsel %vm350_vm0, %v650_v27, 0.0 }
 0x1a2   : > { %v1297_v30 = vpop.f32.mrb[2].mxu0  ;;  %657 = vadd.xlane.f32.xlu0 %v656_v29  ;;  %v653_v31 = vsel %vm350_vm0, %v649_v28, 0.0 }
 0x1a3   : > { %v1881_v32 = vadd.f32 %v1297_v30, %v1854_v42  ;;  %v439_v33 = vpop.f32.mrb[3].mxu0  ;;  %654 = vadd.xlane.f32.xlu1 %v653_v31 }
 0x1a4   : > { %v1884_v34 = vadd.f32 %v1854_v42, %v439_v33 }
 0x1a5   : > { %v451_v35 = vmul.f32 %v1881_v32, %v1881_v32 }
 0x1a6   : > { %v450_v36 = vmul.f32 %v1884_v34, %v1884_v34 }
 0x1a7   : > { %v461_v37 = vsel %vm350_vm0, %v451_v35, 0.0 }
 0x1a8   : > { %462 = vadd.xlane.f32.xlu0 %v461_v37  ;;  %v458_v39 = vsel %vm350_vm0, %v450_v36, 0.0 }
 0x1a9   : > { %459 = vadd.xlane.f32.xlu1 %v458_v39 }
 0x1ba   : > { %v1311_v40 = vpop.f32.mrb[2].mxu1 }
 0x1bb   : > { %v1893_v41 = vadd.f32 %v1311_v40, %v1854_v42  ;;  %v640_v38 = vpop.f32.mrb[3].mxu1 }
 0x1bc   : > { %v1896_v44 = vadd.f32 %v1854_v42, %v640_v38 }
 0x1bd   : > { %v652_v46 = vmul.f32 %v1893_v41, %v1893_v41 }
 0x1be   : > { %v651_v47 = vmul.f32 %v1896_v44, %v1896_v44 }
 0x1bf   : > { %v662_v48 = vsel %vm350_vm0, %v652_v46, 0.0 }
 0x1c0   : > { %663 = vadd.xlane.f32.xlu0 %v662_v48  ;;  %v659_v49 = vsel %vm350_vm0, %v651_v47, 0.0 }
 0x1c1   : > { %660 = vadd.xlane.f32.xlu1 %v659_v49 }
 0x1d8   : > { %v1336_v50 = vpop.f32.mrb[4].mxu1 }
 0x1d9   : > { %v1032_v19 = vpop.f32.mrb[5].mxu1  ;;  %v1905_v53 = vadd.f32 %v1336_v50, %v1854_v42 }
 0x1da   : > { %v1911_v22 = vadd.f32 %v1854_v42, %v1032_v19 }
 0x1db   : > { %v1322_v51 = vpop.f32.mrb[4].mxu0  ;;  %v1052_v61 = vmul.f32 %v1905_v53, %v1905_v53 }
 0x1dc   : > { %v1908_v54 = vadd.f32 %v1322_v51, %v1854_v42  ;;  %v831_v56 = vpop.f32.mrb[5].mxu0  ;;  %v1051_v55 = vmul.f32 %v1911_v22, %v1911_v22 }
 0x1dd   : > { %v1914_v57 = vadd.f32 %v1854_v42, %v831_v56  ;;  %v1058_v63 = vsel %vm350_vm0, %v1052_v61, 0.0 }
 0x1de   : > { %v851_v58 = vmul.f32 %v1908_v54, %v1908_v54  ;;  %v1055_v0 = vsel %vm350_vm0, %v1051_v55, 0.0 }
 0x1df   : > { %v850_v59 = vmul.f32 %v1914_v57, %v1914_v57 }
 0x1e0   : > { %v857_v60 = vsel %vm350_vm0, %v851_v58, 0.0 }
 0x1e1   : > { %858 = vadd.xlane.f32.xlu0 %v857_v60  ;;  %v854_v62 = vsel %vm350_vm0, %v850_v59, 0.0 }
 0x1e2   : > { %855 = vadd.xlane.f32.xlu1 %v854_v62 }
 0x1e5   : > { %1059 = vadd.xlane.f32.xlu0 %v1058_v63 }
 0x1e6   : > { %1056 = vadd.xlane.f32.xlu1 %v1055_v0 }
 0x1ec   : > { %v1325_v1 = vpop.f32.mrb[6].mxu0 }
 0x1ed   : > { %v1929_v2 = vadd.f32 %v1325_v1, %v1854_v42  ;;  %v841_v3 = vpop.f32.mrb[7].mxu0 }
 0x1ee   : > { %v1932_v4 = vadd.f32 %v1854_v42, %v841_v3 }
 0x1ef   : > { %v853_v5 = vmul.f32 %v1929_v2, %v1929_v2 }
 0x1f0   : > { %v852_v6 = vmul.f32 %v1932_v4, %v1932_v4 }
 0x1f1   : > { %v863_v7 = vsel %vm350_vm0, %v853_v5, 0.0 }
 0x1f2   : > { %864 = vadd.xlane.f32.xlu0 %v863_v7  ;;  %v860_v8 = vsel %vm350_vm0, %v852_v6, 0.0 }
 0x1f3   : > { %861 = vadd.xlane.f32.xlu1 %v860_v8 }
 0x204   : > { %v1339_v9 = vpop.f32.mrb[6].mxu1 }
 0x205   : > { %v1941_v10 = vadd.f32 %v1339_v9, %v1854_v42  ;;  %v1042_v11 = vpop.f32.mrb[7].mxu1 }
 0x206   : > { %v1944_v12 = vadd.f32 %v1854_v42, %v1042_v11 }
 0x207   : > { %v1054_v13 = vmul.f32 %v1941_v10, %v1941_v10 }
 0x208   : > { %v1053_v14 = vmul.f32 %v1944_v12, %v1944_v12 }
 0x209   : > { %v1064_v15 = vsel %vm350_vm0, %v1054_v13, 0.0 }
 0x20a   : > { %1065 = vadd.xlane.f32.xlu0 %v1064_v15  ;;  %v1061_v45 = vsel %vm350_vm0, %v1053_v14, 0.0 }
 0x20b   : > { %1062 = vadd.xlane.f32.xlu1 %v1061_v45 }
 0x224   : > { %v1952_v43 = vpop.xlane.xlu0 %456 }
 0x225   : > { %v1954_v52 = vpop.xlane.xlu1 %453 }
 0x22f   : > { %v658_v18 = vpop.xlane.xlu0 %657 }
 0x230   : > { %v666_v20 = vadd.f32 1e-12, %v658_v18  ;;  %v655_v42 = vpop.xlane.xlu1 %654 }
 0x231   : > { %v665_v21 = vadd.f32 1e-12, %v655_v42 }
 0x232   : > { %1466 = vrsqrt.f32 %v666_v20 }
 0x233   : > { %1468 = vrsqrt.f32 %v665_v21 }
 0x235   : > { %v1958_v29 = vpop.xlane.xlu0 %462 }
 0x236   : > { %v1960_v30 = vpop.xlane.xlu1 %459 }
 0x23c   : > { %v1467_v23 = vpop.eup %1466 }
 0x23d   : > { %v1469_v25 = vpop.eup %1468  ;;  %v674_v27 = vmul.f32 %v1467_v23, %v1869_v24 }
 0x23e   : > { %v673_v28 = vmul.f32 %v1469_v25, %v1872_v26 }
 0x23f   : > { %1085 = vrot.lane.b32.xlu0 %v674_v27, %s1574_s8 }
 0x240   : > { %1083 = vrot.lane.b32.xlu1 %v673_v28, %s1574_s8 }
 0x24d   : > { %v664_v31 = vpop.xlane.xlu0 %663 }
 0x24e   : > { %v668_v33 = vadd.f32 1e-12, %v664_v31  ;;  %v661_v35 = vpop.xlane.xlu1 %660 }
 0x24f   : > { %v667_v36 = vadd.f32 1e-12, %v661_v35 }
 0x250   : > { %1470 = vrsqrt.f32 %v668_v33  ;;  %v466_v33 = vadd.f32 1e-12, %v1960_v30 }
 0x251   : > { %1472 = vrsqrt.f32 %v667_v36 }
 0x25a   : > { %v1471_v37 = vpop.eup %1470 }
 0x25b   : > { %v676_v39 = vmul.f32 %v1471_v37, %v1893_v41  ;;  %v1473_v40 = vpop.eup %1472 }
 0x25c   : > { %v675_v24 = vmul.f32 %v1473_v40, %v1896_v44 }
 0x25d   : > { %1089 = vrot.lane.b32.xlu1 %v676_v39, %s1574_s8 }
 0x261   : > { %1087 = vrot.lane.b32.xlu1 %v675_v24, %s1574_s8 }
 0x26e   : > { %v859_v26 = vpop.xlane.xlu0 %858 }
 0x26f   : > { %v867_v38 = vadd.f32 1e-12, %v859_v26  ;;  %v856_v46 = vpop.xlane.xlu1 %855 }
 0x270   : > { %v866_v47 = vadd.f32 1e-12, %v856_v46 }
 0x271   : > { %1474 = vrsqrt.f32 %v867_v38 }
 0x272   : > { %1476 = vrsqrt.f32 %v866_v47  ;;  %v1060_v48 = vpop.xlane.xlu0 %1059 }
 0x273   : > { %v1068_v49 = vadd.f32 1e-12, %v1060_v48  ;;  %v1057_v50 = vpop.xlane.xlu1 %1056 }
 0x274   : > { %v1067_v19 = vadd.f32 1e-12, %v1057_v50 }
 0x275   : > { %1478 = vrsqrt.f32 %v1068_v49 }
 0x276   : > { %1480 = vrsqrt.f32 %v1067_v19 }
 0x27b   : > { %v1475_v51 = vpop.eup %1474 }
 0x27c   : > { %v1477_v56 = vpop.eup %1476  ;;  %v875_v41 = vmul.f32 %v1475_v51, %v1908_v54 }
 0x27d   : > { %v874_v58 = vmul.f32 %v1477_v56, %v1914_v57 }
 0x27e   : > { %1101 = vrot.lane.b32.xlu1 %v875_v41, %s1575_s9 }
 0x27f   : > { %v1479_v44 = vpop.eup %1478  ;;  %1099 = vrot.lane.b32.xlu0 %v874_v58, %s1575_s9  ;;  %v865_v59 = vpop.xlane.xlu0 %864 }
 0x280   : > { %v1481_v60 = vpop.eup %1480  ;;  %v869_v61 = vadd.f32 1e-12, %v865_v59  ;;  %v862_v62 = vpop.xlane.xlu1 %861  ;;  %v1076_v55 = vmul.f32 %v1479_v44, %v1905_v53 }
 0x281   : > { %v868_v63 = vadd.f32 1e-12, %v862_v62  ;;  %v1075_v0 = vmul.f32 %v1481_v60, %v1911_v22 }
 0x282   : > { %1482 = vrsqrt.f32 %v869_v61  ;;  %1117 = vrot.lane.b32.xlu1 %v1076_v55, %s1576_s10 }
 0x283   : > { %1484 = vrsqrt.f32 %v868_v63  ;;  %1115 = vrot.lane.b32.xlu0 %v1075_v0, %s1576_s10 }
 0x28c   : > { %v1483_v54 = vpop.eup %1482 }
 0x28d   : > { %v1485_v57 = vpop.eup %1484  ;;  %v877_v1 = vmul.f32 %v1483_v54, %v1929_v2  ;;  %v465_v2 = vadd.f32 1e-12, %v1952_v43 }
 0x28e   : > { %v876_v3 = vmul.f32 %v1485_v57, %v1932_v4  ;;  %v464_v4 = vadd.f32 1e-12, %v1954_v52 }
 0x28f   : > { %1105 = vrot.lane.b32.xlu1 %v877_v1, %s1575_s9 }
 0x290   : > { %1103 = vrot.lane.b32.xlu0 %v876_v3, %s1575_s9 }
 0x297   : > { %v1066_v5 = vpop.xlane.xlu0 %1065 }
 0x298   : > { %v1070_v6 = vadd.f32 1e-12, %v1066_v5  ;;  %v1063_v7 = vpop.xlane.xlu1 %1062 }
 0x299   : > { %v1069_v53 = vadd.f32 1e-12, %v1063_v7 }
 0x29a   : > { %1486 = vrsqrt.f32 %v1070_v6 }
 0x29b   : > { %1488 = vrsqrt.f32 %v1069_v53 }
 0x29c   : > { %1490 = vrsqrt.f32 %v465_v2 }
 0x29d   : > { %1492 = vrsqrt.f32 %v464_v4 }
 0x2a4   : > { %v1487_v22 = vpop.eup %1486 }
 0x2a5   : > { %v1489_v8 = vpop.eup %1488  ;;  %v1078_v9 = vmul.f32 %v1487_v22, %v1941_v10 }
 0x2a6   : > { %v1077_v11 = vmul.f32 %v1489_v8, %v1944_v12  ;;  %v1491_v18 = vpop.eup %1490 }
 0x2a7   : > { %1121 = vrot.lane.b32.xlu1 %v1078_v9, %s1576_s10  ;;  %v1493_v20 = vpop.eup %1492  ;;  %v473_v10 = vmul.f32 %v1491_v18, %v1857_v16 }
 0x2a8   : > { %1119 = vrot.lane.b32.xlu0 %v1077_v11, %s1576_s10  ;;  %v472_v43 = vmul.f32 %v1493_v20, %v1860_v17  ;;  %v467_v17 = vadd.f32 1e-12, %v1958_v29 }
 0x2aa   : > { %1494 = vrsqrt.f32 %v467_v17 }
 0x2ab   : > { %1496 = vrsqrt.f32 %v466_v33 }
 0x2b1   : > { %v1086_v45 = vpop.permute.xlu0 %1085 }
 0x2b2   : > { %v1084_v13 = vpop.permute.xlu1 %1083  ;;  %v1128_v52 = vsel %vm350_vm0, %v473_v10, %v1086_v45 }
 0x2b3   : > { %v1127_v21 = vsel %vm350_vm0, %v472_v43, %v1084_v13 }
 0x2b4   : > { %v1495_v35 = vpop.eup %1494 }
 0x2b5   : > { %v1497_v36 = vpop.eup %1496  ;;  %v475_v39 = vmul.f32 %v1495_v35, %v1881_v32 }
 0x2b6   : > { %v474_v24 = vmul.f32 %v1497_v36, %v1884_v34 }
 0x2cf   : > { %v1090_v14 = vpop.permute.xlu1 %1089 }
 0x2d0   : > { %v1130_v26 = vsel %vm350_vm0, %v475_v39, %v1090_v14 }
 0x2d3   : > { %v1088_v15 = vpop.permute.xlu1 %1087 }
 0x2d4   : > { %v1129_v29 = vsel %vm350_vm0, %v474_v24, %v1088_v15 }
 0x2f0   : > { %v1102_v42 = vpop.permute.xlu1 %1101 }
 0x2f1   : > { %v1100_v12 = vpop.permute.xlu0 %1099  ;;  %v1133_v23 = vsel %vm1131_vm1, %v1128_v52, %v1102_v42 }
 0x2f2   : > { %v1132_v27 = vsel %vm1131_vm1, %v1127_v21, %v1100_v12 }
 0x2f4   : > { %v1118_v25 = vpop.permute.xlu1 %1117 }
 0x2f5   : > { %v1138_v28 = vsel %vm1136_vm2, %v1133_v23, %v1118_v25  ;;  %v1116_v31 = vpop.permute.xlu0 %1115 }
 0x2f6   : > { %1142 = vst [vmem:[%s218_s13 + $0x8] sm:$0xff] %v1138_v28  ;;  %v1137_v16 = vsel %vm1136_vm2, %v1132_v27, %v1116_v31 }
 0x2f7   : > { %1141 = vst [vmem:[%s218_s13] sm:$0xff] %v1137_v16 }
 0x301   : > { %v1106_v37 = vpop.permute.xlu1 %1105 }
 0x302   : > { %v1104_v40 = vpop.permute.xlu0 %1103  ;;  %v1135_v30 = vsel %vm1131_vm1, %v1130_v26, %v1106_v37 }
 0x303   : > { %v1134_v32 = vsel %vm1131_vm1, %v1129_v29, %v1104_v40 }
 0x319   : > { %v1122_v38 = vpop.permute.xlu1 %1121 }
 0x31a   : > { %v1140_v34 = vsel %vm1136_vm2, %v1135_v30, %v1122_v38  ;;  %v1120_v46 = vpop.permute.xlu0 %1119 }
 0x31b   : > { %1144 = vst [vmem:[%s218_s13 + $0x18] sm:$0xff] %v1140_v34  ;;  %v1139_v47 = vsel %vm1136_vm2, %v1134_v32, %v1120_v46 }
 0x31c   : > { %1143 = vst [vmem:[%s218_s13 + $0x10] sm:$0xff] %v1139_v47 }
 0x31d   : > { %1511 = shalt.err (!%p1508_p3)
}
 0x31e   : > { %s1512_s7 = scalar_lea.hbm %s1998_s23, 512  ;;  %s1516_s10 = scalar_lea.hbm %s2051_s5, 1024 }
 0x31f   : > { %p1513_p4 = scmp.ne.s32.totalorder %s1998_s23, %s1512_s7  ;;  %p1517_p9 = scmp.lt.u32.totalorder %s1998_s23, %s2051_s5 }
 0x320   : > { %p1518_p10 = scmp.lt.u32.totalorder %s1516_s10, %s1512_s7  ;;  %p1520_p12 = scmp.lt.u32.totalorder %s1512_s7, %s1998_s23 }
 0x321   : > { %p1514_p7 = pnand %p1513_p4, %p1648_p5 }
 0x322   : > { %p1519_p11 = por %p1518_p10, %p1517_p9 }
 0x323   : > { %p1515_p8 = pneg %p1514_p7 }
 0x324   : > { %p1521_p13 = por %p1520_p12, %p1519_p11 }
 0x326   : > { %p1522_p0 = pnand %p1521_p13, %p1515_p8 }
 0x328   : > { %1525 = shalt.err (!%p1522_p0)
}
 0x329   : > { %s1578_s13 = smov 128   ;;  %s1579_s15 = smov 8  }
 0x32a   : > { %1372 = dma.vmem_to_hbm [thread:$0]  (%p1648_p5), %s1992_s14, 512, %s1998_s23, %s2005_s22, %s1578_s13, %s1578_s13, %s1579_s15  }
 0x32b PF: > { %p1378_p1 = scmp.ge.s32.totalorder %s1560_s21, 2  ;;  %s1174_s16 = sand.u32 1, %s1548_s18  }
 0x32c   : > { %s1175_s17 = scalar_lea.sflag [#allocation3], %s1174_s16 }
 0x32d   : > { %p1375_p2 = pnand %p1378_p1, %p1652_p6 }
 0x32f   : > { %1543 = dma.done.wait (!%p1375_p2), %s1175_s17, 512  }
 0x330   : > { %1545 = vsyncadd (!%p1375_p2), %s1175_s17, 4294966784  ;;  %p15_p3 = scmp.ge.s32.totalorder %s1635_s24, 4   ;;  %s2054_s18 = smov %s1552_s19 }
 0x331   : > { %s2055_s19 = smov %s1556_s20  ;;  %s2056_s20 = smov %s1646_s27 }
 0x332   : > { %s2057_s21 = smov %s1635_s24  ;;  %17 = sbr.rel (!%p15_p3) target bundleno = 3 (0x3), region = 75 }
 0x339   :  { %1180 = vsyncpa [#allocation3], 1 }
 0x33a   :  { %1182 = vsyncpa [#allocation3 + $0x1], 1 }

</bundles_post_ra>
